<compile_context>
chip_gen: v6e
topology: v6e:2x2x1
jax: 0.10.0
libtpu: 0.0.40
codegen_flags: <defaults>
</compile_context>

<pallas_src>
import jax
import jax.numpy as jnp
from jax.experimental import pallas as pl
from jax.experimental.pallas import tpu as pltpu


# ----------------------------- Pallas kernel -------------------------------

def geldm_fused_kernel(patches_ref, wc_ref, bc_ref, wfc_ref, bfc_ref,
                       enc_ref, fc_ref):
    """Fused conv3x3(im2col) + bias + ReLU + two-head FC.

    patches_ref : [B, 9*Cin, H*W]   im2col patches, rows ordered (kh,kw,ci)
    wc_ref      : [Cout, 9*Cin]     conv weight matching the patch row order
    bc_ref      : [Cout, 1]         conv bias
    wfc_ref     : [Cout, H*W, 2*Z]  fused (mu|logvar) weight, NCHW-flatten order
    bfc_ref     : [1, 2*Z]          fused FC bias
    enc_ref     : [B, Cout, H*W]    encoder output (NCHW-flattened, f32)
    fc_ref      : [B, 2*Z]          concat(mu, logvar)
    """
    B = patches_ref.shape[0]
    Cout, HW, two_z = wfc_ref.shape

    wc = wc_ref[...]
    bc = bc_ref[...]

    # ---- conv 3x3 + bias + ReLU: one MXU matmul per image (im2col). -------
    # Result layout [Cout, HW] keeps the lane dim at HW=256 (lane-dense).
    for b in range(B):                       # B tiny & static -> unrolled
        eb = jnp.dot(wc, patches_ref[b], preferred_element_type=jnp.float32)
        eb = jnp.maximum(eb + bc, 0.0)       # [Cout, HW]
        enc_ref[b] = eb.astype(enc_ref.dtype)

    # ---- fused FC heads on the NCHW-flattened activation. -----------------
    # fc[b, z] = sum_{c,p} enc[b, c, p] * wfc[c, p, z] + bfc[z]
    enc = enc_ref[...]                       # [B, Cout, HW]
    acc = jnp.zeros((B, two_z), jnp.float32)
    for c in range(Cout):                    # 8 dots, K = HW = 256 each
        xc = enc[:, c, :].astype(wfc_ref.dtype)            # [B, HW]
        acc = acc + jnp.dot(xc, wfc_ref[c],
                            preferred_element_type=jnp.float32)
    fc_ref[...] = acc + bfc_ref[...]


_VMEM = pl.BlockSpec(memory_space=pltpu.MemorySpace.VMEM)


# ------------------------------ JAX wrapper --------------------------------

def geldm_forward(x_nchw, params, compute_dtype=jnp.float32):
    """Forward pass equivalent to gELDM.forward.

    Returns (mu, logvar, encoder_out) with encoder_out in NCHW like PyTorch.
    `compute_dtype=jnp.bfloat16` enables the native bf16 MXU path on
    v5e/v6e/v7x (f32 accumulation kept); default f32 preserves PyTorch numerics.
    """
    w_conv, b_conv, w_mu, b_mu, w_lv, b_lv = params     # PyTorch-native layouts
    B, Cin, H, W = x_nchw.shape
    Cout = w_conv.shape[0]
    Z = w_mu.shape[0]
    HW = H * W

    # --- im2col in the wrapper (XLA side):
    #     patches[b, (kh*3+kw)*Cin + ci, h*W + w] = x_pad[b, ci, h+kh, w+kw]
    x_pad = jnp.pad(x_nchw, ((0, 0), (0, 0), (1, 1), (1, 1)))
    taps = [x_pad[:, :, kh:kh + H, kw:kw + W].reshape(B, Cin, HW)
            for kh in range(3) for kw in range(3)]
    patches = jnp.concatenate(taps, axis=1).astype(compute_dtype)  # [B, 9Cin, HW]

    # --- repack weights wrapper-side (tiny, one-time XLA ops).
    # Conv2d.weight [Cout, Cin, 3, 3] -> [Cout, (kh,kw,ci)] matching patch rows.
    wc2d = jnp.transpose(w_conv, (0, 2, 3, 1)).reshape(Cout, 9 * Cin)
    wc2d = wc2d.astype(compute_dtype)
    bc2d = b_conv.reshape(Cout, 1).astype(jnp.float32)
    # Fused FC heads: PyTorch Linear weight is [out, in] = [Z, D], with D in
    # NCHW-flatten order, so W_cat.T reshaped to [Cout, HW, 2Z] lines up with
    # enc[b, c, p] with no in-kernel transpose.
    w_cat = jnp.concatenate([w_mu, w_lv], axis=0)                   # [2Z, D]
    wfc3 = w_cat.T.reshape(Cout, HW, 2 * Z).astype(compute_dtype)   # [Cout,HW,2Z]
    bfc = jnp.concatenate([b_mu, b_lv]).reshape(1, 2 * Z).astype(jnp.float32)

    enc_flat, fc_out = pl.pallas_call(
        geldm_fused_kernel,
        out_shape=(jax.ShapeDtypeStruct((B, Cout, HW), jnp.float32),
                   jax.ShapeDtypeStruct((B, 2 * Z), jnp.float32)),
        in_specs=[_VMEM] * 5,
        out_specs=(_VMEM, _VMEM),
        # TODO(synk): if B/H/W grow, add a grid over B ("parallel" -> both v7x
        # TensorCores), switch to (8,128)-aligned tiled BlockSpecs, and set
        # vmem_limit_bytes explicitly (v7x VMEM is 64 MiB vs 128 MiB v5e/v6e).
    )(patches, wc2d, bc2d, wfc3, bfc)

    mu = fc_out[:, :Z]
    logvar = fc_out[:, Z:]
    enc_nchw = enc_flat.reshape(B, Cout, H, W)   # pure-metadata reshape
    return mu, logvar, enc_nchw


def init_params(key, cin, cout, h, w, z):
    """Deterministic synthetic parameters in PyTorch-native layouts."""
    k0, k1, k2, k3, k4, k5 = jax.random.split(key, 6)
    w_conv = jax.random.normal(k0, (cout, cin, 3, 3), jnp.float32) * 0.1  # Conv2d.weight
    b_conv = jax.random.normal(k1, (cout,), jnp.float32) * 0.1            # Conv2d.bias
    d = cout * h * w
    w_mu = jax.random.normal(k2, (z, d), jnp.float32) * 0.02              # Linear.weight
    b_mu = jax.random.normal(k3, (z,), jnp.float32) * 0.02
    w_lv = jax.random.normal(k4, (z, d), jnp.float32) * 0.02
    b_lv = jax.random.normal(k5, (z,), jnp.float32) * 0.02
    return (w_conv, b_conv, w_mu, b_mu, w_lv, b_lv)


if __name__ == "__main__":
    B, Cin, H, W = 2, 4, 16, 16
    Cout, Z = 8, 16

    key = jax.random.PRNGKey(0)
    kx, kp = jax.random.split(key)
    x = jax.random.normal(kx, (B, Cin, H, W), jnp.float32)
    params = init_params(kp, Cin, Cout, H, W, Z)

    fwd = jax.jit(geldm_forward, static_argnames=("compute_dtype",))
    # Default f32 operands (PyTorch numerics); pass compute_dtype=jnp.bfloat16
    # for the bf16 MXU fast path on v6e/v7x.
    mu, logvar, enc = fwd(x, params)
    jax.block_until_ready((mu, logvar, enc))

    assert mu.shape == (B, Z)
    assert logvar.shape == (B, Z)
    assert enc.shape == (B, Cout, H, W)
    print("KERNEL_OK")
</pallas_src>

<mosaic_0001>
module attributes {stable_mosaic.version = 11 : i64} {
  func.func @geldm_fused_kernel(%arg0: memref<2x36x256xf32, #tpu.memory_space<vmem>>, %arg1: memref<8x36xf32, #tpu.memory_space<vmem>>, %arg2: memref<8x1xf32, #tpu.memory_space<vmem>>, %arg3: memref<8x256x32xf32, #tpu.memory_space<vmem>>, %arg4: memref<1x32xf32, #tpu.memory_space<vmem>>, %arg5: memref<2x8x256xf32, #tpu.memory_space<vmem>>, %arg6: memref<2x32xf32, #tpu.memory_space<vmem>>) attributes {dimension_semantics = [], scalar_prefetch = 0 : i64, scratch_operands = 0 : i64, tpu.core_type = #tpu.core_type<tc>} {
    %c0 = arith.constant 0 : index
    %c0_0 = arith.constant 0 : index
    %0 = vector.load %arg1[%c0, %c0_0] : memref<8x36xf32, #tpu.memory_space<vmem>>, vector<8x36xf32>
    %c0_1 = arith.constant 0 : index
    %c0_2 = arith.constant 0 : index
    %1 = vector.load %arg2[%c0_1, %c0_2] : memref<8x1xf32, #tpu.memory_space<vmem>>, vector<8x1xf32>
    %c0_3 = arith.constant 0 : index
    %c0_4 = arith.constant 0 : index
    %c0_5 = arith.constant 0 : index
    %2 = vector.load %arg0[%c0_3, %c0_4, %c0_5] : memref<2x36x256xf32, #tpu.memory_space<vmem>>, vector<1x36x256xf32>
    %3 = vector.shape_cast %2 : vector<1x36x256xf32> to vector<36x256xf32>
    %cst = arith.constant dense<0.000000e+00> : vector<8x256xf32>
    %4 = tpu.matmul %0, %3, %cst {dimension_numbers = #tpu.dot_dimension_numbers<[1], [0], [0], [1], [0, 0, 1, 1], [], []>} : vector<8x36xf32>, vector<36x256xf32>, vector<8x256xf32> -> vector<8x256xf32>
    %5 = vector.broadcast %1 : vector<8x1xf32> to vector<8x256xf32>
    %6 = arith.addf %4, %5 : vector<8x256xf32>
    %cst_6 = arith.constant 0.000000e+00 : f32
    %7 = vector.broadcast %cst_6 : f32 to vector<8x256xf32>
    %8 = arith.maximumf %6, %7 : vector<8x256xf32>
    %c0_7 = arith.constant 0 : index
    %c0_8 = arith.constant 0 : index
    %c0_9 = arith.constant 0 : index
    %9 = vector.load %arg5[%c0_7, %c0_8, %c0_9] : memref<2x8x256xf32, #tpu.memory_space<vmem>>, vector<1x8x256xf32>
    %10 = vector.shape_cast %9 : vector<1x8x256xf32> to vector<8x256xf32>
    %11 = vector.shape_cast %8 : vector<8x256xf32> to vector<1x8x256xf32>
    tpu.vector_store %arg5[%c0_7, %c0_8, %c0_9], %11 {strides = array<i32>} : memref<2x8x256xf32, #tpu.memory_space<vmem>>, vector<1x8x256xf32>,
    %c1 = arith.constant 1 : index
    %c0_10 = arith.constant 0 : index
    %c0_11 = arith.constant 0 : index
    %12 = vector.load %arg0[%c1, %c0_10, %c0_11] : memref<2x36x256xf32, #tpu.memory_space<vmem>>, vector<1x36x256xf32>
    %13 = vector.shape_cast %12 : vector<1x36x256xf32> to vector<36x256xf32>
    %cst_12 = arith.constant dense<0.000000e+00> : vector<8x256xf32>
    %14 = tpu.matmul %0, %13, %cst_12 {dimension_numbers = #tpu.dot_dimension_numbers<[1], [0], [0], [1], [0, 0, 1, 1], [], []>} : vector<8x36xf32>, vector<36x256xf32>, vector<8x256xf32> -> vector<8x256xf32>
    %15 = vector.broadcast %1 : vector<8x1xf32> to vector<8x256xf32>
    %16 = arith.addf %14, %15 : vector<8x256xf32>
    %cst_13 = arith.constant 0.000000e+00 : f32
    %17 = vector.broadcast %cst_13 : f32 to vector<8x256xf32>
    %18 = arith.maximumf %16, %17 : vector<8x256xf32>
    %c1_14 = arith.constant 1 : index
    %c0_15 = arith.constant 0 : index
    %c0_16 = arith.constant 0 : index
    %19 = vector.load %arg5[%c1_14, %c0_15, %c0_16] : memref<2x8x256xf32, #tpu.memory_space<vmem>>, vector<1x8x256xf32>
    %20 = vector.shape_cast %19 : vector<1x8x256xf32> to vector<8x256xf32>
    %21 = vector.shape_cast %18 : vector<8x256xf32> to vector<1x8x256xf32>
    tpu.vector_store %arg5[%c1_14, %c0_15, %c0_16], %21 {strides = array<i32>} : memref<2x8x256xf32, #tpu.memory_space<vmem>>, vector<1x8x256xf32>,
    %c0_17 = arith.constant 0 : index
    %c0_18 = arith.constant 0 : index
    %c0_19 = arith.constant 0 : index
    %22 = vector.load %arg5[%c0_17, %c0_18, %c0_19] : memref<2x8x256xf32, #tpu.memory_space<vmem>>, vector<2x8x256xf32>
    %cst_20 = arith.constant 0.000000e+00 : f32
    %23 = vector.broadcast %cst_20 : f32 to vector<2x32xf32>
    %24 = vector.extract_strided_slice %22 {offsets = [0, 0, 0], sizes = [2, 1, 256], strides = [1, 1, 1]} : vector<2x8x256xf32> to vector<2x1x256xf32>
    %25 = vector.shape_cast %24 : vector<2x1x256xf32> to vector<2x256xf32>
    %c0_21 = arith.constant 0 : index
    %c0_22 = arith.constant 0 : index
    %c0_23 = arith.constant 0 : index
    %26 = vector.load %arg3[%c0_21, %c0_22, %c0_23] : memref<8x256x32xf32, #tpu.memory_space<vmem>>, vector<1x256x32xf32>
    %27 = vector.shape_cast %26 : vector<1x256x32xf32> to vector<256x32xf32>
    %cst_24 = arith.constant dense<0.000000e+00> : vector<2x32xf32>
    %28 = tpu.matmul %25, %27, %cst_24 {dimension_numbers = #tpu.dot_dimension_numbers<[1], [0], [0], [1], [0, 0, 1, 1], [], []>} : vector<2x256xf32>, vector<256x32xf32>, vector<2x32xf32> -> vector<2x32xf32>
    %29 = arith.addf %23, %28 : vector<2x32xf32>
    %30 = vector.extract_strided_slice %22 {offsets = [0, 1, 0], sizes = [2, 1, 256], strides = [1, 1, 1]} : vector<2x8x256xf32> to vector<2x1x256xf32>
    %31 = vector.shape_cast %30 : vector<2x1x256xf32> to vector<2x256xf32>
    %c1_25 = arith.constant 1 : index
    %c0_26 = arith.constant 0 : index
    %c0_27 = arith.constant 0 : index
    %32 = vector.load %arg3[%c1_25, %c0_26, %c0_27] : memref<8x256x32xf32, #tpu.memory_space<vmem>>, vector<1x256x32xf32>
    %33 = vector.shape_cast %32 : vector<1x256x32xf32> to vector<256x32xf32>
    %cst_28 = arith.constant dense<0.000000e+00> : vector<2x32xf32>
    %34 = tpu.matmul %31, %33, %cst_28 {dimension_numbers = #tpu.dot_dimension_numbers<[1], [0], [0], [1], [0, 0, 1, 1], [], []>} : vector<2x256xf32>, vector<256x32xf32>, vector<2x32xf32> -> vector<2x32xf32>
    %35 = arith.addf %29, %34 : vector<2x32xf32>
    %36 = vector.extract_strided_slice %22 {offsets = [0, 2, 0], sizes = [2, 1, 256], strides = [1, 1, 1]} : vector<2x8x256xf32> to vector<2x1x256xf32>
    %37 = vector.shape_cast %36 : vector<2x1x256xf32> to vector<2x256xf32>
    %c2 = arith.constant 2 : index
    %c0_29 = arith.constant 0 : index
    %c0_30 = arith.constant 0 : index
    %38 = vector.load %arg3[%c2, %c0_29, %c0_30] : memref<8x256x32xf32, #tpu.memory_space<vmem>>, vector<1x256x32xf32>
    %39 = vector.shape_cast %38 : vector<1x256x32xf32> to vector<256x32xf32>
    %cst_31 = arith.constant dense<0.000000e+00> : vector<2x32xf32>
    %40 = tpu.matmul %37, %39, %cst_31 {dimension_numbers = #tpu.dot_dimension_numbers<[1], [0], [0], [1], [0, 0, 1, 1], [], []>} : vector<2x256xf32>, vector<256x32xf32>, vector<2x32xf32> -> vector<2x32xf32>
    %41 = arith.addf %35, %40 : vector<2x32xf32>
    %42 = vector.extract_strided_slice %22 {offsets = [0, 3, 0], sizes = [2, 1, 256], strides = [1, 1, 1]} : vector<2x8x256xf32> to vector<2x1x256xf32>
    %43 = vector.shape_cast %42 : vector<2x1x256xf32> to vector<2x256xf32>
    %c3 = arith.constant 3 : index
    %c0_32 = arith.constant 0 : index
    %c0_33 = arith.constant 0 : index
    %44 = vector.load %arg3[%c3, %c0_32, %c0_33] : memref<8x256x32xf32, #tpu.memory_space<vmem>>, vector<1x256x32xf32>
    %45 = vector.shape_cast %44 : vector<1x256x32xf32> to vector<256x32xf32>
    %cst_34 = arith.constant dense<0.000000e+00> : vector<2x32xf32>
    %46 = tpu.matmul %43, %45, %cst_34 {dimension_numbers = #tpu.dot_dimension_numbers<[1], [0], [0], [1], [0, 0, 1, 1], [], []>} : vector<2x256xf32>, vector<256x32xf32>, vector<2x32xf32> -> vector<2x32xf32>
    %47 = arith.addf %41, %46 : vector<2x32xf32>
    %48 = vector.extract_strided_slice %22 {offsets = [0, 4, 0], sizes = [2, 1, 256], strides = [1, 1, 1]} : vector<2x8x256xf32> to vector<2x1x256xf32>
    %49 = vector.shape_cast %48 : vector<2x1x256xf32> to vector<2x256xf32>
    %c4 = arith.constant 4 : index
    %c0_35 = arith.constant 0 : index
    %c0_36 = arith.constant 0 : index
    %50 = vector.load %arg3[%c4, %c0_35, %c0_36] : memref<8x256x32xf32, #tpu.memory_space<vmem>>, vector<1x256x32xf32>
    %51 = vector.shape_cast %50 : vector<1x256x32xf32> to vector<256x32xf32>
    %cst_37 = arith.constant dense<0.000000e+00> : vector<2x32xf32>
    %52 = tpu.matmul %49, %51, %cst_37 {dimension_numbers = #tpu.dot_dimension_numbers<[1], [0], [0], [1], [0, 0, 1, 1], [], []>} : vector<2x256xf32>, vector<256x32xf32>, vector<2x32xf32> -> vector<2x32xf32>
    %53 = arith.addf %47, %52 : vector<2x32xf32>
    %54 = vector.extract_strided_slice %22 {offsets = [0, 5, 0], sizes = [2, 1, 256], strides = [1, 1, 1]} : vector<2x8x256xf32> to vector<2x1x256xf32>
    %55 = vector.shape_cast %54 : vector<2x1x256xf32> to vector<2x256xf32>
    %c5 = arith.constant 5 : index
    %c0_38 = arith.constant 0 : index
    %c0_39 = arith.constant 0 : index
    %56 = vector.load %arg3[%c5, %c0_38, %c0_39] : memref<8x256x32xf32, #tpu.memory_space<vmem>>, vector<1x256x32xf32>
    %57 = vector.shape_cast %56 : vector<1x256x32xf32> to vector<256x32xf32>
    %cst_40 = arith.constant dense<0.000000e+00> : vector<2x32xf32>
    %58 = tpu.matmul %55, %57, %cst_40 {dimension_numbers = #tpu.dot_dimension_numbers<[1], [0], [0], [1], [0, 0, 1, 1], [], []>} : vector<2x256xf32>, vector<256x32xf32>, vector<2x32xf32> -> vector<2x32xf32>
    %59 = arith.addf %53, %58 : vector<2x32xf32>
    %60 = vector.extract_strided_slice %22 {offsets = [0, 6, 0], sizes = [2, 1, 256], strides = [1, 1, 1]} : vector<2x8x256xf32> to vector<2x1x256xf32>
    %61 = vector.shape_cast %60 : vector<2x1x256xf32> to vector<2x256xf32>
    %c6 = arith.constant 6 : index
    %c0_41 = arith.constant 0 : index
    %c0_42 = arith.constant 0 : index
    %62 = vector.load %arg3[%c6, %c0_41, %c0_42] : memref<8x256x32xf32, #tpu.memory_space<vmem>>, vector<1x256x32xf32>
    %63 = vector.shape_cast %62 : vector<1x256x32xf32> to vector<256x32xf32>
    %cst_43 = arith.constant dense<0.000000e+00> : vector<2x32xf32>
    %64 = tpu.matmul %61, %63, %cst_43 {dimension_numbers = #tpu.dot_dimension_numbers<[1], [0], [0], [1], [0, 0, 1, 1], [], []>} : vector<2x256xf32>, vector<256x32xf32>, vector<2x32xf32> -> vector<2x32xf32>
    %65 = arith.addf %59, %64 : vector<2x32xf32>
    %66 = vector.extract_strided_slice %22 {offsets = [0, 7, 0], sizes = [2, 1, 256], strides = [1, 1, 1]} : vector<2x8x256xf32> to vector<2x1x256xf32>
    %67 = vector.shape_cast %66 : vector<2x1x256xf32> to vector<2x256xf32>
    %c7 = arith.constant 7 : index
    %c0_44 = arith.constant 0 : index
    %c0_45 = arith.constant 0 : index
    %68 = vector.load %arg3[%c7, %c0_44, %c0_45] : memref<8x256x32xf32, #tpu.memory_space<vmem>>, vector<1x256x32xf32>
    %69 = vector.shape_cast %68 : vector<1x256x32xf32> to vector<256x32xf32>
    %cst_46 = arith.constant dense<0.000000e+00> : vector<2x32xf32>
    %70 = tpu.matmul %67, %69, %cst_46 {dimension_numbers = #tpu.dot_dimension_numbers<[1], [0], [0], [1], [0, 0, 1, 1], [], []>} : vector<2x256xf32>, vector<256x32xf32>, vector<2x32xf32> -> vector<2x32xf32>
    %71 = arith.addf %65, %70 : vector<2x32xf32>
    %c0_47 = arith.constant 0 : index
    %c0_48 = arith.constant 0 : index
    %72 = vector.load %arg4[%c0_47, %c0_48] : memref<1x32xf32, #tpu.memory_space<vmem>>, vector<1x32xf32>
    %73 = vector.broadcast %72 : vector<1x32xf32> to vector<2x32xf32>
    %74 = arith.addf %71, %73 : vector<2x32xf32>
    %c0_49 = arith.constant 0 : index
    %c0_50 = arith.constant 0 : index
    %75 = vector.load %arg6[%c0_49, %c0_50] : memref<2x32xf32, #tpu.memory_space<vmem>>, vector<2x32xf32>
    tpu.vector_store %arg6[%c0_49, %c0_50], %74 {strides = array<i32>} : memref<2x32xf32, #tpu.memory_space<vmem>>, vector<2x32xf32>,
    return
  }
}

</mosaic_0001>

<bundles_post_ra>
// kernel: geldm_forward.1
= control target key start
LH: loop header
LB: loop body
LE: loop exit
PB: predicated region body
PF: predicated region fallthrough
CT: control target
= control target key end

     0   :  { %vm43_vm0 = vcmask 1043456   ;;  %v1660_v3 = vmov 0.0   ;;  %vm39_vm1 = vcmask 293888   ;;  %v1661_v27 = vmov 0   ;;  %s2627_s0 = inlined_call_operand.vmem [shape: f32[2,36,256], index: 0, kind: input, shape index: {}]   ;;  %s2628_s1 = inlined_call_operand.vmem [shape: f32[8,36], index: 1, kind: input, shape index: {}]   ;;  %s2629_s3 = inlined_call_operand.vmem [shape: f32[8,256,32], index: 3, kind: input, shape index: {}]   ;;  %s2630_s2 = inlined_call_operand.vmem [shape: f32[8,1], index: 2, kind: input, shape index: {}]   ;;  %s2631_s5 = inlined_call_operand.vmem [shape: f32[2,8,256], index: 5, kind: output, shape index: {0}]   ;;  %s2632_s4 = inlined_call_operand.vmem [shape: f32[1,32], index: 4, kind: input, shape index: {}]   ;;  %s2633_s6 = inlined_call_operand.vmem [shape: f32[2,32], index: 6, kind: output, shape index: {1}]  }
   0x1   :  { %v33_v0 = vld [vmem:[%s2627_s0 + $0x48] sm:$0xf]  ;;  %v1146_v1 = vld [vmem:[%s2627_s0 + $0x98] sm:$0xf]  ;;  %v32_v2 = vld [vmem:[%s2627_s0 + $0x40] sm:$0xf]  ;;  %114 = vmatprep.mubr.f32.mxu0 %v1660_v3  ;;  %206 = vmatprep.mubr.f32.mxu1 %v1660_v3 }
   0x2   :  { %1134 = vmatprep.subr.msk.mxu0 %vm43_vm0, %v33_v0  ;;  %1147 = vmatprep.subr.msk.mxu1 %vm43_vm0, %v1146_v1  ;;  %v1145_v4 = vld [vmem:[%s2627_s0 + $0x90] sm:$0xf]  ;;  %v31_v5 = vld [vmem:[%s2627_s0 + $0x38] sm:$0xff]  ;;  %v1144_v6 = vld [vmem:[%s2627_s0 + $0x88] sm:$0xff]  ;;  %vm292_vm2 = vcmask 1041409   ;;  %vm1124_vm3 = vcmask 254976  }
   0x3   :  { %1135 = vmatpush1.msk.msra.mxu0 %vm43_vm0, %v32_v2  ;;  %1148 = vmatpush1.msk.msra.mxu1 %vm43_vm0, %v1145_v4  ;;  %v30_v7 = vld [vmem:[%s2627_s0 + $0x30] sm:$0xff]  ;;  %v1143_v8 = vld [vmem:[%s2627_s0 + $0x80] sm:$0xff]  ;;  %v29_v9 = vld [vmem:[%s2627_s0 + $0x28] sm:$0xff] }
   0x4   :  { %74 = vmatprep.subr.mxu0 %v31_v5  ;;  %166 = vmatprep.subr.mxu1 %v1144_v6  ;;  %v1142_v10 = vld [vmem:[%s2627_s0 + $0x78] sm:$0xff]  ;;  %v28_v11 = vld [vmem:[%s2627_s0 + $0x20] sm:$0xff]  ;;  %v1141_v12 = vld [vmem:[%s2627_s0 + $0x70] sm:$0xff] }
   0x5   :  { %75 = vmatpush1.msra.mxu0 %v30_v7  ;;  %167 = vmatpush1.msra.mxu1 %v1143_v8  ;;  %v27_v13 = vld [vmem:[%s2627_s0 + $0x18] sm:$0xff]  ;;  %v1140_v14 = vld [vmem:[%s2627_s0 + $0x68] sm:$0xff]  ;;  %v26_v15 = vld [vmem:[%s2627_s0 + $0x10] sm:$0xff] }
   0x6   :  { %76 = vmatprep.subr.mxu0 %v29_v9  ;;  %168 = vmatprep.subr.mxu1 %v1142_v10  ;;  %v1139_v16 = vld [vmem:[%s2627_s0 + $0x60] sm:$0xff]  ;;  %v25_v17 = vld [vmem:[%s2627_s0 + $0x8] sm:$0xff]  ;;  %v1138_v18 = vld [vmem:[%s2627_s0 + $0x58] sm:$0xff] }
   0x7   :  { %77 = vmatpush1.msra.mxu0 %v28_v11  ;;  %169 = vmatpush1.msra.mxu1 %v1141_v12  ;;  %v24_v19 = vld [vmem:[%s2627_s0] sm:$0xff]  ;;  %v1137_v20 = vld [vmem:[%s2627_s0 + $0x50] sm:$0xff]  ;;  %v1183_v22 = vld [vmem:[%s2629_s3 + $0x1f8] sm:$0xff] }
   0x8   :  { %78 = vmatprep.subr.mxu0 %v27_v13  ;;  %170 = vmatprep.subr.mxu1 %v1140_v14  ;;  %v22_v21 = vld [vmem:[%s2628_s1] sm:$0xff]  ;;  %v253_v24 = vld [vmem:[%s2629_s3 + $0xf8] sm:$0xff]  ;;  %v1182_v28 = vld [vmem:[%s2629_s3 + $0x1f0] sm:$0xff] }
   0x9   :  { %79 = vmatpush1.msra.mxu0 %v26_v15  ;;  %171 = vmatpush1.msra.mxu1 %v1139_v16  ;;  %v23_v23 = vld [vmem:[%s2630_s2] sm:$0xff]  ;;  %v1167_v25 = vld [vmem:[%s2629_s3 + $0x178] sm:$0xff]  ;;  %v252_v29 = vld [vmem:[%s2629_s3 + $0xf0] sm:$0xff] }
   0xa   :  { %80 = vmatprep.subr.mxu0 %v25_v17  ;;  %172 = vmatprep.subr.mxu1 %v1138_v18  ;;  %v237_v26 = vld [vmem:[%s2629_s3 + $0x78] sm:$0xff]  ;;  %v1166_v30 = vld [vmem:[%s2629_s3 + $0x170] sm:$0xff]  ;;  %v1181_v32 = vld [vmem:[%s2629_s3 + $0x1e8] sm:$0xff] }
   0xb   :  { %81 = vmatpush1.msra.mxu0 %v24_v19  ;;  %173 = vmatpush1.msra.mxu1 %v1137_v20  ;;  %v236_v31 = vld [vmem:[%s2629_s3 + $0x70] sm:$0xff]  ;;  %v251_v33 = vld [vmem:[%s2629_s3 + $0xe8] sm:$0xff]  ;;  %v1180_v36 = vld [vmem:[%s2629_s3 + $0x1e0] sm:$0xff] }
   0xc   :  { %1136 = vmatmul.mubr.msk.f32.vlgmr.msra.gmra.mxu0 %vm39_vm1, %v22_v21  ;;  %1149 = vmatmul.mubr.msk.f32.vlgmr.msra.gmra.mxu1 %vm39_vm1, %v22_v21  ;;  %v1165_v34 = vld [vmem:[%s2629_s3 + $0x168] sm:$0xff]  ;;  %v250_v37 = vld [vmem:[%s2629_s3 + $0xe0] sm:$0xff]  ;;  %v1179_v40 = vld [vmem:[%s2629_s3 + $0x1d8] sm:$0xff] }
   0xd   :  { %1659 = vset.pattern.permute.xlu0 %v1661_v27  ;;  %1377 = vmatprep.subr.mxu0 %v1183_v22  ;;  %v235_v35 = vld [vmem:[%s2629_s3 + $0x68] sm:$0xff]  ;;  %v1164_v38 = vld [vmem:[%s2629_s3 + $0x160] sm:$0xff]  ;;  %v249_v41 = vld [vmem:[%s2629_s3 + $0xd8] sm:$0xff] }
   0xe   :  { %36 = vperm.xlu0 %1659, %v23_v23   ;;  %1412 = vmatprep.subr.mxu1 %v253_v24  ;;  %v234_v39 = vld [vmem:[%s2629_s3 + $0x60] sm:$0xff]  ;;  %v1163_v42 = vld [vmem:[%s2629_s3 + $0x158] sm:$0xff]  ;;  %v1178_v44 = vld [vmem:[%s2629_s3 + $0x1d0] sm:$0xff] }
   0xf   :  { %1378 = vmatpush3.msra.mxu0 %v1167_v25  ;;  %1413 = vmatpush3.msra.mxu1 %v237_v26  ;;  %v233_v43 = vld [vmem:[%s2629_s3 + $0x58] sm:$0xff]  ;;  %v248_v45 = vld [vmem:[%s2629_s3 + $0xd0] sm:$0xff]  ;;  %v1177_v48 = vld [vmem:[%s2629_s3 + $0x1c8] sm:$0xff] }
  0x10   :  { %1379 = vmatprep.subr.mxu0 %v1182_v28  ;;  %1414 = vmatprep.subr.mxu1 %v252_v29  ;;  %v1162_v46 = vld [vmem:[%s2629_s3 + $0x150] sm:$0xff]  ;;  %v247_v49 = vld [vmem:[%s2629_s3 + $0xc8] sm:$0xff]  ;;  %v1176_v52 = vld [vmem:[%s2629_s3 + $0x1c0] sm:$0xff] }
  0x11   :  { %1380 = vmatpush3.msra.mxu0 %v1166_v30  ;;  %1415 = vmatpush3.msra.mxu1 %v236_v31  ;;  %v232_v47 = vld [vmem:[%s2629_s3 + $0x50] sm:$0xff]  ;;  %v1161_v50 = vld [vmem:[%s2629_s3 + $0x148] sm:$0xff]  ;;  %v246_v53 = vld [vmem:[%s2629_s3 + $0xc0] sm:$0xff] }
  0x12   :  { %1381 = vmatprep.subr.mxu0 %v1181_v32  ;;  %1416 = vmatprep.subr.mxu1 %v251_v33  ;;  %v231_v51 = vld [vmem:[%s2629_s3 + $0x48] sm:$0xff]  ;;  %v1160_v54 = vld [vmem:[%s2629_s3 + $0x140] sm:$0xff]  ;;  %v1175_v56 = vld [vmem:[%s2629_s3 + $0x1b8] sm:$0xff] }
  0x13   :  { %1382 = vmatpush3.msra.mxu0 %v1165_v34  ;;  %1417 = vmatpush3.msra.mxu1 %v235_v35  ;;  %v230_v55 = vld [vmem:[%s2629_s3 + $0x40] sm:$0xff]  ;;  %v245_v57 = vld [vmem:[%s2629_s3 + $0xb8] sm:$0xff]  ;;  %v1174_v60 = vld [vmem:[%s2629_s3 + $0x1b0] sm:$0xff] }
  0x14   :  { %1383 = vmatprep.subr.mxu0 %v1180_v36  ;;  %1418 = vmatprep.subr.mxu1 %v250_v37  ;;  %v1159_v58 = vld [vmem:[%s2629_s3 + $0x138] sm:$0xff]  ;;  %v244_v61 = vld [vmem:[%s2629_s3 + $0xb0] sm:$0xff]  ;;  %v1173_v0 = vld [vmem:[%s2629_s3 + $0x1a8] sm:$0xff] }
  0x15   :  { %1384 = vmatpush3.msra.mxu0 %v1164_v38  ;;  %1419 = vmatpush3.msra.mxu1 %v234_v39  ;;  %v229_v59 = vld [vmem:[%s2629_s3 + $0x38] sm:$0xff]  ;;  %v1158_v62 = vld [vmem:[%s2629_s3 + $0x130] sm:$0xff]  ;;  %v243_v1 = vld [vmem:[%s2629_s3 + $0xa8] sm:$0xff] }
  0x16   :  { %1385 = vmatprep.subr.mxu0 %v1179_v40  ;;  %1420 = vmatprep.subr.mxu1 %v249_v41  ;;  %v228_v63 = vld [vmem:[%s2629_s3 + $0x30] sm:$0xff]  ;;  %v1157_v2 = vld [vmem:[%s2629_s3 + $0x128] sm:$0xff]  ;;  %v1172_v4 = vld [vmem:[%s2629_s3 + $0x1a0] sm:$0xff] }
  0x17   :  { %1386 = vmatpush3.msra.mxu0 %v1163_v42  ;;  %1421 = vmatpush3.msra.mxu1 %v233_v43  ;;  %v227_v3 = vld [vmem:[%s2629_s3 + $0x28] sm:$0xff]  ;;  %v242_v5 = vld [vmem:[%s2629_s3 + $0xa0] sm:$0xff]  ;;  %v1171_v8 = vld [vmem:[%s2629_s3 + $0x198] sm:$0xff] }
  0x18   :  { %1387 = vmatprep.subr.mxu0 %v1178_v44  ;;  %1422 = vmatprep.subr.mxu1 %v248_v45  ;;  %v1156_v6 = vld [vmem:[%s2629_s3 + $0x120] sm:$0xff]  ;;  %v241_v9 = vld [vmem:[%s2629_s3 + $0x98] sm:$0xff]  ;;  %v1170_v12 = vld [vmem:[%s2629_s3 + $0x190] sm:$0xff] }
  0x19   :  { %1388 = vmatpush3.msra.mxu0 %v1162_v46  ;;  %1423 = vmatpush3.msra.mxu1 %v232_v47  ;;  %v226_v7 = vld [vmem:[%s2629_s3 + $0x20] sm:$0xff]  ;;  %v1155_v10 = vld [vmem:[%s2629_s3 + $0x118] sm:$0xff]  ;;  %v240_v13 = vld [vmem:[%s2629_s3 + $0x90] sm:$0xff] }
  0x1a   :  { %1389 = vmatprep.subr.mxu0 %v1177_v48  ;;  %1424 = vmatprep.subr.mxu1 %v247_v49  ;;  %v225_v11 = vld [vmem:[%s2629_s3 + $0x18] sm:$0xff]  ;;  %v1154_v14 = vld [vmem:[%s2629_s3 + $0x110] sm:$0xff]  ;;  %v1169_v16 = vld [vmem:[%s2629_s3 + $0x188] sm:$0xff] }
  0x1b   :  { %1390 = vmatpush3.msra.mxu0 %v1161_v50  ;;  %1425 = vmatpush3.msra.mxu1 %v231_v51  ;;  %v224_v15 = vld [vmem:[%s2629_s3 + $0x10] sm:$0xff]  ;;  %v239_v17 = vld [vmem:[%s2629_s3 + $0x88] sm:$0xff]  ;;  %v1168_v20 = vld [vmem:[%s2629_s3 + $0x180] sm:$0xff] }
  0x1c   :  { %1391 = vmatprep.subr.mxu0 %v1176_v52  ;;  %1426 = vmatprep.subr.mxu1 %v246_v53  ;;  %v1153_v18 = vld [vmem:[%s2629_s3 + $0x108] sm:$0xff]  ;;  %v238_v21 = vld [vmem:[%s2629_s3 + $0x80] sm:$0xff]  ;;  %v1215_v24 = vld [vmem:[%s2629_s3 + $0x2f8] sm:$0xff] }
  0x1d   :  { %1392 = vmatpush3.msra.mxu0 %v1160_v54  ;;  %1427 = vmatpush3.msra.mxu1 %v230_v55  ;;  %v223_v19 = vld [vmem:[%s2629_s3 + $0x8] sm:$0xff]  ;;  %v1152_v22 = vld [vmem:[%s2629_s3 + $0x100] sm:$0xff]  ;;  %v1247_v25 = vld [vmem:[%s2629_s3 + $0x3f8] sm:$0xff] }
  0x1e   :  { %1393 = vmatprep.subr.mxu0 %v1175_v56  ;;  %1428 = vmatprep.subr.mxu1 %v245_v57  ;;  %v222_v23 = vld [vmem:[%s2629_s3] sm:$0xff]  ;;  %v1199_v47 = vld [vmem:[%s2629_s3 + $0x278] sm:$0xff]  ;;  %v1214_v53 = vld [vmem:[%s2629_s3 + $0x2f0] sm:$0xff] }
  0x1f   :  { %1394 = vmatpush3.msra.mxu0 %v1159_v58  ;;  %1429 = vmatpush3.msra.mxu1 %v229_v59  ;;  %v1231_v48 = vld [vmem:[%s2629_s3 + $0x378] sm:$0xff]  ;;  %v1246_v54 = vld [vmem:[%s2629_s3 + $0x3f0] sm:$0xff] }
  0x20   :  { %1395 = vmatprep.subr.mxu0 %v1174_v60  ;;  %1430 = vmatprep.subr.mxu1 %v244_v61  ;;  %v1198_v58 = vld [vmem:[%s2629_s3 + $0x270] sm:$0xff] }
  0x21   :  { %1396 = vmatpush3.msra.mxu0 %v1158_v62  ;;  %1431 = vmatpush3.msra.mxu1 %v228_v63  ;;  %v1230_v59 = vld [vmem:[%s2629_s3 + $0x370] sm:$0xff] }
  0x22   :  { %1397 = vmatprep.subr.mxu0 %v1173_v0  ;;  %1432 = vmatprep.subr.mxu1 %v243_v1  ;;  %v1213_v0 = vld [vmem:[%s2629_s3 + $0x2e8] sm:$0xff] }
  0x23   :  { %1398 = vmatpush3.msra.mxu0 %v1157_v2  ;;  %1433 = vmatpush3.msra.mxu1 %v227_v3  ;;  %v1245_v1 = vld [vmem:[%s2629_s3 + $0x3e8] sm:$0xff] }
  0x24   :  { %1399 = vmatprep.subr.mxu0 %v1172_v4  ;;  %1434 = vmatprep.subr.mxu1 %v242_v5  ;;  %v1197_v5 = vld [vmem:[%s2629_s3 + $0x268] sm:$0xff] }
  0x25   :  { %1400 = vmatpush3.msra.mxu0 %v1156_v6  ;;  %1435 = vmatpush3.msra.mxu1 %v226_v7  ;;  %v1229_v6 = vld [vmem:[%s2629_s3 + $0x368] sm:$0xff] }
  0x26   :  { %1401 = vmatprep.subr.mxu0 %v1171_v8  ;;  %1436 = vmatprep.subr.mxu1 %v241_v9 }
  0x27   :  { %1402 = vmatpush3.msra.mxu0 %v1155_v10  ;;  %1437 = vmatpush3.msra.mxu1 %v225_v11  ;;  %v1212_v11 = vld [vmem:[%s2629_s3 + $0x2e0] sm:$0xff] }
  0x28   :  { %1403 = vmatprep.subr.mxu0 %v1170_v12  ;;  %1438 = vmatprep.subr.mxu1 %v240_v13  ;;  %v1244_v12 = vld [vmem:[%s2629_s3 + $0x3e0] sm:$0xff] }
  0x29   :  { %1404 = vmatpush3.msra.mxu0 %v1154_v14  ;;  %1439 = vmatpush3.msra.mxu1 %v224_v15 }
  0x2a   :  { %1405 = vmatprep.subr.mxu0 %v1169_v16  ;;  %1440 = vmatprep.subr.mxu1 %v239_v17  ;;  %v1196_v16 = vld [vmem:[%s2629_s3 + $0x260] sm:$0xff] }
  0x2b   :  { %1406 = vmatpush3.msra.mxu0 %v1153_v18  ;;  %1441 = vmatpush3.msra.mxu1 %v223_v19  ;;  %v1228_v17 = vld [vmem:[%s2629_s3 + $0x360] sm:$0xff] }
  0x2c   :  { %1407 = vmatprep.subr.mxu0 %v1168_v20  ;;  %1442 = vmatprep.subr.mxu1 %v238_v21  ;;  %v1211_v20 = vld [vmem:[%s2629_s3 + $0x2d8] sm:$0xff] }
  0x2d   :  { %1408 = vmatpush3.msra.mxu0 %v1152_v22  ;;  %1443 = vmatpush3.msra.mxu1 %v222_v23  ;;  %v1243_v21 = vld [vmem:[%s2629_s3 + $0x3d8] sm:$0xff] }
  0x2e   :  { %1447 = vmatprep.subr.mxu0 %v1215_v24  ;;  %1482 = vmatprep.subr.mxu1 %v1247_v25  ;;  %v1195_v23 = vld [vmem:[%s2629_s3 + $0x258] sm:$0xff]  ;;  %v1210_v25 = vld [vmem:[%s2629_s3 + $0x2d0] sm:$0xff] }
  0x2f   :  { %v1227_v24 = vld [vmem:[%s2629_s3 + $0x358] sm:$0xff] }
  0x89   :  { %v37_v26 = vpop.permute.xlu0 %36 }
  0xcc   :  { %v116_v27 = vpop.f32.mrf.mxu0  ;;  %v208_v28 = vpop.f32.mrf.mxu1 }
  0xcd   :  { %v117_v29 = vadd.f32 %v116_v27, %v37_v26  ;;  %v209_v30 = vadd.f32 %v208_v28, %v37_v26  ;;  %v1194_v27 = vld [vmem:[%s2629_s3 + $0x250] sm:$0xff] }
  0xce   :  { %v118_v31 = vpop.f32.mrf.mxu0  ;;  %v210_v32 = vpop.f32.mrf.mxu1  ;;  %v1226_v28 = vld [vmem:[%s2629_s3 + $0x350] sm:$0xff] }
  0xcf   :  { %v1961_v33 = vmax.f32 %v117_v29, 0.0  ;;  %v1963_v34 = vmax.f32 %v209_v30, 0.0  ;;  %v119_v35 = vadd.f32 %v118_v31, %v37_v26  ;;  %v211_v36 = vadd.f32 %v210_v32, %v37_v26  ;;  %v1242_v26 = vld [vmem:[%s2629_s3 + $0x3d0] sm:$0xff]  ;;  %v1209_v29 = vld [vmem:[%s2629_s3 + $0x2c8] sm:$0xff] }
  0xd0   :  { %v1241_v30 = vld [vmem:[%s2629_s3 + $0x3c8] sm:$0xff] }
  0xd1   :  { %123 = vst [vmem:[%s2631_s5] sm:$0xff] %v1961_v33  ;;  %1150 = vst [vmem:[%s2631_s5 + $0x10] sm:$0xff] %v1963_v34  ;;  %v1973_v37 = vmax.f32 %v119_v35, 0.0  ;;  %v1975_v38 = vmax.f32 %v211_v36, 0.0  ;;  %v291_v39 = vrot.slane %v1961_v33, 1  ;;  %v368_v40 = vrot.slane %v1963_v34, 7  ;;  %v1193_v31 = vld [vmem:[%s2629_s3 + $0x248] sm:$0xff] }
  0xd2   :  { %v701_v55 = vrot.slane %v1961_v33, 4  ;;  %v702_v56 = vrot.slane %v1963_v34, 3  ;;  %v813_v60 = vrot.slane %v1961_v33, 5  ;;  %v814_v61 = vrot.slane %v1963_v34, 4  ;;  %v1225_v32 = vld [vmem:[%s2629_s3 + $0x348] sm:$0xff]  ;;  %v1208_v35 = vld [vmem:[%s2629_s3 + $0x2c0] sm:$0xff] }
  0xd3   :  { %124 = vst [vmem:[%s2631_s5 + $0x8] sm:$0xff] %v1973_v37  ;;  %1151 = vst [vmem:[%s2631_s5 + $0x18] sm:$0xff] %v1975_v38  ;;  %v294_v41 = vrot.slane %v1973_v37, 1  ;;  %v370_v42 = vrot.slane %v1975_v38, 7  ;;  %v480_v43 = vrot.slane %v1973_v37, 2  ;;  %v481_v44 = vrot.slane %v1975_v38, 1 }
  0xd4   :  { %v592_v49 = vrot.slane %v1973_v37, 3  ;;  %v593_v50 = vrot.slane %v1975_v38, 2  ;;  %v293_v51 = vsel %vm292_vm2, %v1963_v34, %v291_v39  ;;  %v369_v52 = vsel %vm292_vm2, %v368_v40, %v1961_v33  ;;  %v1240_v36 = vld [vmem:[%s2629_s3 + $0x3c0] sm:$0xff] }
  0xd5   :  { %v295_v45 = vsel %vm292_vm2, %v1975_v38, %v294_v41  ;;  %v371_v46 = vsel %vm292_vm2, %v370_v42, %v1973_v37  ;;  %v482_v57 = vsel %vm292_vm2, %v481_v44, %v480_v43  ;;  %v928_v62 = vrot.slane %v1973_v37, 6  ;;  %v1192_v39 = vld [vmem:[%s2629_s3 + $0x240] sm:$0xff]  ;;  %v1207_v41 = vld [vmem:[%s2629_s3 + $0x2b8] sm:$0xff] }
  0xd6   :  { %362 = vmatprep.mubr.f32.mxu0 %v295_v45  ;;  %438 = vmatprep.mubr.f32.mxu1 %v371_v46  ;;  %v594_v63 = vsel %vm292_vm2, %v593_v50, %v592_v49  ;;  %v2033_v2 = vsel %vm292_vm2, %v702_v56, %v701_v55  ;;  %v929_v3 = vrot.slane %v1975_v38, 5  ;;  %v1040_v4 = vrot.slane %v1973_v37, 7  ;;  %v1224_v40 = vld [vmem:[%s2629_s3 + $0x340] sm:$0xff]  ;;  %v1239_v42 = vld [vmem:[%s2629_s3 + $0x3b8] sm:$0xff]  ;;  %v1206_v45 = vld [vmem:[%s2629_s3 + $0x2b0] sm:$0xff] }
  0xd7   :  { %363 = vmatmul.mubr.f32.vlgmr.msra.gmra.mxu0 %v293_v51  ;;  %439 = vmatmul.mubr.f32.vlgmr.msra.gmra.mxu1 %v369_v52  ;;  %v2044_v7 = vsel %vm292_vm2, %v814_v61, %v813_v60  ;;  %v1041_v8 = vrot.slane %v1975_v38, 6  ;;  %v925_v9 = vrot.slane %v1961_v33, 6  ;;  %v926_v10 = vrot.slane %v1963_v34, 5  ;;  %v1191_v43 = vld [vmem:[%s2629_s3 + $0x238] sm:$0xff]  ;;  %v1238_v46 = vld [vmem:[%s2629_s3 + $0x3b0] sm:$0xff]  ;;  %v1205_v49 = vld [vmem:[%s2629_s3 + $0x2a8] sm:$0xff] }
  0xd8   :  { %1448 = vmatpush3.msra.mxu0 %v1199_v47  ;;  %1483 = vmatpush3.msra.mxu1 %v1231_v48  ;;  %v2056_v13 = vsel %vm292_vm2, %v929_v3, %v928_v62  ;;  %v1037_v14 = vrot.slane %v1961_v33, 7  ;;  %v1038_v15 = vrot.slane %v1963_v34, 6  ;;  %v1223_v44 = vld [vmem:[%s2629_s3 + $0x338] sm:$0xff]  ;;  %v1190_v47 = vld [vmem:[%s2629_s3 + $0x230] sm:$0xff]  ;;  %v1237_v50 = vld [vmem:[%s2629_s3 + $0x3a8] sm:$0xff] }
  0xd9   :  { %1449 = vmatprep.subr.mxu0 %v1214_v53  ;;  %549 = vmatprep.mubr.f32.mxu0 %v482_v57  ;;  %v2067_v18 = vsel %vm292_vm2, %v1041_v8, %v1040_v4  ;;  %v2070_v19 = vsel %vm292_vm2, %v926_v10, %v925_v9  ;;  %v1222_v48 = vld [vmem:[%s2629_s3 + $0x330] sm:$0xff]  ;;  %v1189_v51 = vld [vmem:[%s2629_s3 + $0x228] sm:$0xff]  ;;  %v1204_v53 = vld [vmem:[%s2629_s3 + $0x2a0] sm:$0xff]  ;;  %v477_v9 = vrot.slane %v1961_v33, 2  ;;  %v478_v10 = vrot.slane %v1963_v34, 1 }
  0xda   :  { %1484 = vmatprep.subr.mxu1 %v1246_v54  ;;  %661 = vmatprep.mubr.f32.mxu1 %v594_v63  ;;  %v2079_v22 = vsel %vm292_vm2, %v1038_v15, %v1037_v14  ;;  %v1221_v52 = vld [vmem:[%s2629_s3 + $0x328] sm:$0xff]  ;;  %v1236_v54 = vld [vmem:[%s2629_s3 + $0x3a0] sm:$0xff]  ;;  %v1203_v57 = vld [vmem:[%s2629_s3 + $0x298] sm:$0xff] }
  0xdb   :  { %1450 = vmatpush3.msra.mxu0 %v1198_v58  ;;  %1485 = vmatpush3.msra.mxu1 %v1230_v59  ;;  %v1188_v55 = vld [vmem:[%s2629_s3 + $0x220] sm:$0xff]  ;;  %v1235_v58 = vld [vmem:[%s2629_s3 + $0x398] sm:$0xff]  ;;  %v1202_v61 = vld [vmem:[%s2629_s3 + $0x290] sm:$0xff] }
  0xdc   :  { %1451 = vmatprep.subr.mxu0 %v1213_v0  ;;  %1486 = vmatprep.subr.mxu1 %v1245_v1  ;;  %v1220_v56 = vld [vmem:[%s2629_s3 + $0x320] sm:$0xff]  ;;  %v1187_v59 = vld [vmem:[%s2629_s3 + $0x218] sm:$0xff]  ;;  %v1234_v62 = vld [vmem:[%s2629_s3 + $0x390] sm:$0xff] }
  0xdd   :  { %1452 = vmatpush3.msra.mxu0 %v1197_v5  ;;  %1487 = vmatpush3.msra.mxu1 %v1229_v6  ;;  %v1219_v60 = vld [vmem:[%s2629_s3 + $0x318] sm:$0xff]  ;;  %v1186_v63 = vld [vmem:[%s2629_s3 + $0x210] sm:$0xff]  ;;  %v1201_v1 = vld [vmem:[%s2629_s3 + $0x288] sm:$0xff] }
  0xde   :  { %1453 = vmatprep.subr.mxu0 %v1212_v11  ;;  %1488 = vmatprep.subr.mxu1 %v1244_v12  ;;  %v1218_v0 = vld [vmem:[%s2629_s3 + $0x310] sm:$0xff]  ;;  %v1233_v3 = vld [vmem:[%s2629_s3 + $0x388] sm:$0xff]  ;;  %v1200_v6 = vld [vmem:[%s2629_s3 + $0x280] sm:$0xff]  ;;  %v589_v11 = vrot.slane %v1961_v33, 3  ;;  %v590_v12 = vrot.slane %v1963_v34, 2 }
  0xdf   :  { %1454 = vmatpush3.msra.mxu0 %v1196_v16  ;;  %1489 = vmatpush3.msra.mxu1 %v1228_v17  ;;  %v1185_v4 = vld [vmem:[%s2629_s3 + $0x208] sm:$0xff]  ;;  %v1232_v8 = vld [vmem:[%s2629_s3 + $0x380] sm:$0xff]  ;;  %v704_v16 = vrot.slane %v1973_v37, 4  ;;  %v705_v17 = vrot.slane %v1975_v38, 3  ;;  %v1279_v33 = vld [vmem:[%s2629_s3 + $0x4f8] sm:$0xff] }
  0xe0   :  { %1455 = vmatprep.subr.mxu0 %v1211_v20  ;;  %1490 = vmatprep.subr.mxu1 %v1243_v21  ;;  %v1217_v5 = vld [vmem:[%s2629_s3 + $0x308] sm:$0xff]  ;;  %v1184_v14 = vld [vmem:[%s2629_s3 + $0x200] sm:$0xff]  ;;  %v1311_v34 = vld [vmem:[%s2629_s3 + $0x5f8] sm:$0xff]  ;;  %v816_v20 = vrot.slane %v1973_v37, 5  ;;  %v817_v21 = vrot.slane %v1975_v38, 4 }
  0xe1   :  { %1456 = vmatpush3.msra.mxu0 %v1195_v23  ;;  %1491 = vmatpush3.msra.mxu1 %v1227_v24  ;;  %v1216_v15 = vld [vmem:[%s2629_s3 + $0x300] sm:$0xff]  ;;  %v479_v23 = vsel %vm292_vm2, %v478_v10, %v477_v9  ;;  %v591_v24 = vsel %vm292_vm2, %v590_v12, %v589_v11  ;;  %v706_v37 = vsel %vm292_vm2, %v705_v17, %v704_v16  ;;  %v1278_v38 = vld [vmem:[%s2629_s3 + $0x4f0] sm:$0xff]  ;;  %v1251_v16 = vld [vmem:[%s2629_s3 + $0x418] sm:$0xff] }
  0xe2   :  { %1457 = vmatprep.subr.mxu0 %v1210_v25  ;;  %1492 = vmatprep.subr.mxu1 %v1242_v26  ;;  %v1263_v25 = vld [vmem:[%s2629_s3 + $0x478] sm:$0xff]  ;;  %v1268_v9 = vld [vmem:[%s2629_s3 + $0x4a0] sm:$0xff] }
  0xe3   :  { %1458 = vmatpush3.msra.mxu0 %v1194_v27  ;;  %1493 = vmatpush3.msra.mxu1 %v1226_v28  ;;  %v1295_v26 = vld [vmem:[%s2629_s3 + $0x578] sm:$0xff]  ;;  %v1310_v27 = vld [vmem:[%s2629_s3 + $0x5f0] sm:$0xff]  ;;  %v818_v28 = vsel %vm292_vm2, %v817_v21, %v816_v20  ;;  %v1300_v10 = vld [vmem:[%s2629_s3 + $0x5a0] sm:$0xff] }
  0xe4   :  { %1459 = vmatprep.subr.mxu0 %v1209_v29  ;;  %1494 = vmatprep.subr.mxu1 %v1241_v30  ;;  %v1262_v29 = vld [vmem:[%s2629_s3 + $0x470] sm:$0xff]  ;;  %v1252_v11 = vld [vmem:[%s2629_s3 + $0x420] sm:$0xff]  ;;  %v1283_v17 = vld [vmem:[%s2629_s3 + $0x518] sm:$0xff] }
  0xe5   :  { %1460 = vmatpush3.msra.mxu0 %v1193_v31  ;;  %1495 = vmatpush3.msra.mxu1 %v1225_v32  ;;  %v1294_v30 = vld [vmem:[%s2629_s3 + $0x570] sm:$0xff]  ;;  %v1277_v31 = vld [vmem:[%s2629_s3 + $0x4e8] sm:$0xff]  ;;  %v1284_v12 = vld [vmem:[%s2629_s3 + $0x520] sm:$0xff] }
  0xe6   :  { %1461 = vmatprep.subr.mxu0 %v1208_v35  ;;  %1496 = vmatprep.subr.mxu1 %v1240_v36  ;;  %v1309_v32 = vld [vmem:[%s2629_s3 + $0x5e8] sm:$0xff]  ;;  %v1250_v20 = vld [vmem:[%s2629_s3 + $0x410] sm:$0xff] }
  0xe7   :  { %1462 = vmatpush3.msra.mxu0 %v1192_v39  ;;  %1497 = vmatpush3.msra.mxu1 %v1224_v40  ;;  %v1261_v35 = vld [vmem:[%s2629_s3 + $0x468] sm:$0xff]  ;;  %v1276_v39 = vld [vmem:[%s2629_s3 + $0x4e0] sm:$0xff]  ;;  %v1282_v21 = vld [vmem:[%s2629_s3 + $0x510] sm:$0xff] }
  0xe8   :  { %1463 = vmatprep.subr.mxu0 %v1207_v41  ;;  %1498 = vmatprep.subr.mxu1 %v1239_v42  ;;  %v1293_v36 = vld [vmem:[%s2629_s3 + $0x568] sm:$0xff]  ;;  %v1308_v40 = vld [vmem:[%s2629_s3 + $0x5e0] sm:$0xff] }
  0xe9   :  { %1464 = vmatpush3.msra.mxu0 %v1191_v43  ;;  %1499 = vmatpush3.msra.mxu1 %v1223_v44  ;;  %v1260_v41 = vld [vmem:[%s2629_s3 + $0x460] sm:$0xff]  ;;  %v1275_v43 = vld [vmem:[%s2629_s3 + $0x4d8] sm:$0xff] }
  0xea   :  { %1465 = vmatprep.subr.mxu0 %v1206_v45  ;;  %1500 = vmatprep.subr.mxu1 %v1238_v46  ;;  %v1292_v42 = vld [vmem:[%s2629_s3 + $0x560] sm:$0xff]  ;;  %v1307_v44 = vld [vmem:[%s2629_s3 + $0x5d8] sm:$0xff] }
  0xeb   :  { %1466 = vmatpush3.msra.mxu0 %v1190_v47  ;;  %1501 = vmatpush3.msra.mxu1 %v1222_v48  ;;  %v1259_v45 = vld [vmem:[%s2629_s3 + $0x458] sm:$0xff]  ;;  %v1274_v47 = vld [vmem:[%s2629_s3 + $0x4d0] sm:$0xff] }
  0xec   :  { %1467 = vmatprep.subr.mxu0 %v1205_v49  ;;  %1502 = vmatprep.subr.mxu1 %v1237_v50  ;;  %v1291_v46 = vld [vmem:[%s2629_s3 + $0x558] sm:$0xff]  ;;  %v1306_v48 = vld [vmem:[%s2629_s3 + $0x5d0] sm:$0xff] }
  0xed   :  { %1468 = vmatpush3.msra.mxu0 %v1189_v51  ;;  %1503 = vmatpush3.msra.mxu1 %v1221_v52  ;;  %v1258_v49 = vld [vmem:[%s2629_s3 + $0x450] sm:$0xff]  ;;  %v1273_v51 = vld [vmem:[%s2629_s3 + $0x4c8] sm:$0xff] }
  0xee   :  { %1469 = vmatprep.subr.mxu0 %v1204_v53  ;;  %1504 = vmatprep.subr.mxu1 %v1236_v54  ;;  %v1290_v50 = vld [vmem:[%s2629_s3 + $0x550] sm:$0xff]  ;;  %v1305_v52 = vld [vmem:[%s2629_s3 + $0x5c8] sm:$0xff] }
  0xef   :  { %1470 = vmatpush3.msra.mxu0 %v1188_v55  ;;  %1505 = vmatpush3.msra.mxu1 %v1220_v56  ;;  %v1257_v53 = vld [vmem:[%s2629_s3 + $0x448] sm:$0xff]  ;;  %v1272_v55 = vld [vmem:[%s2629_s3 + $0x4c0] sm:$0xff] }
  0xf0   :  { %1471 = vmatprep.subr.mxu0 %v1203_v57  ;;  %1506 = vmatprep.subr.mxu1 %v1235_v58  ;;  %v1289_v54 = vld [vmem:[%s2629_s3 + $0x548] sm:$0xff]  ;;  %v1304_v56 = vld [vmem:[%s2629_s3 + $0x5c0] sm:$0xff] }
  0xf1   :  { %1472 = vmatpush3.msra.mxu0 %v1187_v59  ;;  %1507 = vmatpush3.msra.mxu1 %v1219_v60  ;;  %v1256_v57 = vld [vmem:[%s2629_s3 + $0x440] sm:$0xff]  ;;  %v1271_v59 = vld [vmem:[%s2629_s3 + $0x4b8] sm:$0xff] }
  0xf2   :  { %1473 = vmatprep.subr.mxu0 %v1202_v61  ;;  %1508 = vmatprep.subr.mxu1 %v1234_v62  ;;  %v1288_v58 = vld [vmem:[%s2629_s3 + $0x540] sm:$0xff]  ;;  %v1303_v60 = vld [vmem:[%s2629_s3 + $0x5b8] sm:$0xff] }
  0xf3   :  { %1474 = vmatpush3.msra.mxu0 %v1186_v63  ;;  %1509 = vmatpush3.msra.mxu1 %v1218_v0  ;;  %v1255_v61 = vld [vmem:[%s2629_s3 + $0x438] sm:$0xff]  ;;  %v1270_v63 = vld [vmem:[%s2629_s3 + $0x4b0] sm:$0xff] }
  0xf4   :  { %1475 = vmatprep.subr.mxu0 %v1201_v1  ;;  %1510 = vmatprep.subr.mxu1 %v1233_v3  ;;  %v1287_v62 = vld [vmem:[%s2629_s3 + $0x538] sm:$0xff]  ;;  %v1302_v0 = vld [vmem:[%s2629_s3 + $0x5b0] sm:$0xff] }
  0xf5   :  { %1476 = vmatpush3.msra.mxu0 %v1185_v4  ;;  %1511 = vmatpush3.msra.mxu1 %v1217_v5  ;;  %v1254_v1 = vld [vmem:[%s2629_s3 + $0x430] sm:$0xff]  ;;  %v1269_v4 = vld [vmem:[%s2629_s3 + $0x4a8] sm:$0xff] }
  0xf6   :  { %1477 = vmatprep.subr.mxu0 %v1200_v6  ;;  %1512 = vmatprep.subr.mxu1 %v1232_v8  ;;  %v1286_v3 = vld [vmem:[%s2629_s3 + $0x530] sm:$0xff]  ;;  %v1301_v5 = vld [vmem:[%s2629_s3 + $0x5a8] sm:$0xff] }
  0xf7   :  { %1478 = vmatpush3.msra.mxu0 %v1184_v14  ;;  %1513 = vmatpush3.msra.mxu1 %v1216_v15  ;;  %v1253_v6 = vld [vmem:[%s2629_s3 + $0x428] sm:$0xff]  ;;  %v1267_v14 = vld [vmem:[%s2629_s3 + $0x498] sm:$0xff] }
  0xf8   :  { %550 = vmatmul.mubr.f32.vlgmr.msra.gmra.mxu0 %v479_v23  ;;  %662 = vmatmul.mubr.f32.vlgmr.msra.gmra.mxu1 %v591_v24  ;;  %v1285_v8 = vld [vmem:[%s2629_s3 + $0x528] sm:$0xff]  ;;  %v1299_v15 = vld [vmem:[%s2629_s3 + $0x598] sm:$0xff] }
  0xf9   :  { %1517 = vmatprep.subr.mxu0 %v1279_v33  ;;  %1552 = vmatprep.subr.mxu1 %v1311_v34  ;;  %v1266_v33 = vld [vmem:[%s2629_s3 + $0x490] sm:$0xff]  ;;  %v1265_v23 = vld [vmem:[%s2629_s3 + $0x488] sm:$0xff] }
  0xfa   :  { %1518 = vmatpush3.msra.mxu0 %v1263_v25  ;;  %773 = vmatprep.mubr.f32.mxu0 %v706_v37  ;;  %v1298_v34 = vld [vmem:[%s2629_s3 + $0x590] sm:$0xff]  ;;  %v1297_v24 = vld [vmem:[%s2629_s3 + $0x588] sm:$0xff]  ;;  %v1264_v37 = vld [vmem:[%s2629_s3 + $0x480] sm:$0xff] }
  0xfb   :  { %1553 = vmatpush3.msra.mxu1 %v1295_v26  ;;  %885 = vmatprep.mubr.f32.mxu1 %v818_v28  ;;  %v1249_v25 = vld [vmem:[%s2629_s3 + $0x408] sm:$0xff]  ;;  %v1280_v28 = vld [vmem:[%s2629_s3 + $0x500] sm:$0xff] }
  0xfc   :  { %1519 = vmatprep.subr.mxu0 %v1278_v38  ;;  %1554 = vmatprep.subr.mxu1 %v1310_v27  ;;  %v1281_v26 = vld [vmem:[%s2629_s3 + $0x508] sm:$0xff]  ;;  %v1296_v38 = vld [vmem:[%s2629_s3 + $0x580] sm:$0xff] }
  0xfd   :  { %1520 = vmatpush3.msra.mxu0 %v1262_v29  ;;  %1555 = vmatpush3.msra.mxu1 %v1294_v30  ;;  %v1248_v27 = vld [vmem:[%s2629_s3 + $0x400] sm:$0xff]  ;;  %v1343_v29 = vld [vmem:[%s2629_s3 + $0x6f8] sm:$0xff] }
  0xfe   :  { %1521 = vmatprep.subr.mxu0 %v1277_v31  ;;  %1556 = vmatprep.subr.mxu1 %v1309_v32  ;;  %v1375_v30 = vld [vmem:[%s2629_s3 + $0x7f8] sm:$0xff] }
  0xff   :  { %1522 = vmatpush3.msra.mxu0 %v1261_v35  ;;  %1557 = vmatpush3.msra.mxu1 %v1293_v36  ;;  %v1327_v31 = vld [vmem:[%s2629_s3 + $0x678] sm:$0xff]  ;;  %v1342_v35 = vld [vmem:[%s2629_s3 + $0x6f0] sm:$0xff] }
 0x100   :  { %1523 = vmatprep.subr.mxu0 %v1276_v39  ;;  %1558 = vmatprep.subr.mxu1 %v1308_v40  ;;  %v1359_v32 = vld [vmem:[%s2629_s3 + $0x778] sm:$0xff]  ;;  %v1374_v36 = vld [vmem:[%s2629_s3 + $0x7f0] sm:$0xff]  ;;  %v1341_v39 = vld [vmem:[%s2629_s3 + $0x6e8] sm:$0xff] }
 0x101   :  { %1524 = vmatpush3.msra.mxu0 %v1260_v41  ;;  %1559 = vmatpush3.msra.mxu1 %v1292_v42  ;;  %v1373_v40 = vld [vmem:[%s2629_s3 + $0x7e8] sm:$0xff]  ;;  %v1372_v42 = vld [vmem:[%s2629_s3 + $0x7e0] sm:$0xff] }
 0x102   :  { %1525 = vmatprep.subr.mxu0 %v1275_v43  ;;  %1560 = vmatprep.subr.mxu1 %v1307_v44  ;;  %v1357_v41 = vld [vmem:[%s2629_s3 + $0x768] sm:$0xff]  ;;  %v1324_v43 = vld [vmem:[%s2629_s3 + $0x660] sm:$0xff] }
 0x103   :  { %1526 = vmatpush3.msra.mxu0 %v1259_v45  ;;  %1561 = vmatpush3.msra.mxu1 %v1291_v46  ;;  %v1356_v44 = vld [vmem:[%s2629_s3 + $0x760] sm:$0xff]  ;;  %v1339_v45 = vld [vmem:[%s2629_s3 + $0x6d8] sm:$0xff] }
 0x104   :  { %1527 = vmatprep.subr.mxu0 %v1274_v47  ;;  %1562 = vmatprep.subr.mxu1 %v1306_v48  ;;  %v1371_v46 = vld [vmem:[%s2629_s3 + $0x7d8] sm:$0xff] }
 0x105   :  { %1528 = vmatpush3.msra.mxu0 %v1258_v49  ;;  %1563 = vmatpush3.msra.mxu1 %v1290_v50  ;;  %v1323_v47 = vld [vmem:[%s2629_s3 + $0x658] sm:$0xff]  ;;  %v1338_v49 = vld [vmem:[%s2629_s3 + $0x6d0] sm:$0xff] }
 0x106   :  { %1529 = vmatprep.subr.mxu0 %v1273_v51  ;;  %1564 = vmatprep.subr.mxu1 %v1305_v52  ;;  %v1355_v48 = vld [vmem:[%s2629_s3 + $0x758] sm:$0xff]  ;;  %v1370_v50 = vld [vmem:[%s2629_s3 + $0x7d0] sm:$0xff] }
 0x107   :  { %1530 = vmatpush3.msra.mxu0 %v1257_v53  ;;  %1565 = vmatpush3.msra.mxu1 %v1289_v54  ;;  %v1322_v51 = vld [vmem:[%s2629_s3 + $0x650] sm:$0xff]  ;;  %v1337_v53 = vld [vmem:[%s2629_s3 + $0x6c8] sm:$0xff] }
 0x108   :  { %1531 = vmatprep.subr.mxu0 %v1272_v55  ;;  %1566 = vmatprep.subr.mxu1 %v1304_v56  ;;  %v1354_v52 = vld [vmem:[%s2629_s3 + $0x750] sm:$0xff]  ;;  %v1369_v54 = vld [vmem:[%s2629_s3 + $0x7c8] sm:$0xff] }
 0x109   :  { %1532 = vmatpush3.msra.mxu0 %v1256_v57  ;;  %1567 = vmatpush3.msra.mxu1 %v1288_v58  ;;  %v1321_v55 = vld [vmem:[%s2629_s3 + $0x648] sm:$0xff]  ;;  %v1336_v57 = vld [vmem:[%s2629_s3 + $0x6c0] sm:$0xff] }
 0x10a   :  { %1533 = vmatprep.subr.mxu0 %v1271_v59  ;;  %1568 = vmatprep.subr.mxu1 %v1303_v60  ;;  %v1353_v56 = vld [vmem:[%s2629_s3 + $0x748] sm:$0xff]  ;;  %v1368_v58 = vld [vmem:[%s2629_s3 + $0x7c0] sm:$0xff] }
 0x10b   :  { %1534 = vmatpush3.msra.mxu0 %v1255_v61  ;;  %1569 = vmatpush3.msra.mxu1 %v1287_v62  ;;  %v1320_v59 = vld [vmem:[%s2629_s3 + $0x640] sm:$0xff]  ;;  %v1335_v61 = vld [vmem:[%s2629_s3 + $0x6b8] sm:$0xff] }
 0x10c   :  { %1535 = vmatprep.subr.mxu0 %v1270_v63  ;;  %1570 = vmatprep.subr.mxu1 %v1302_v0  ;;  %v1352_v60 = vld [vmem:[%s2629_s3 + $0x740] sm:$0xff]  ;;  %v1367_v62 = vld [vmem:[%s2629_s3 + $0x7b8] sm:$0xff] }
 0x10d   :  { %1536 = vmatpush3.msra.mxu0 %v1254_v1  ;;  %1571 = vmatpush3.msra.mxu1 %v1286_v3  ;;  %v1319_v63 = vld [vmem:[%s2629_s3 + $0x638] sm:$0xff]  ;;  %v1334_v1 = vld [vmem:[%s2629_s3 + $0x6b0] sm:$0xff] }
 0x10e   :  { %1537 = vmatprep.subr.mxu0 %v1269_v4  ;;  %1572 = vmatprep.subr.mxu1 %v1301_v5  ;;  %v1351_v0 = vld [vmem:[%s2629_s3 + $0x738] sm:$0xff]  ;;  %v1366_v3 = vld [vmem:[%s2629_s3 + $0x7b0] sm:$0xff] }
 0x10f   :  { %1538 = vmatpush3.msra.mxu0 %v1253_v6  ;;  %1573 = vmatpush3.msra.mxu1 %v1285_v8  ;;  %v1318_v4 = vld [vmem:[%s2629_s3 + $0x630] sm:$0xff]  ;;  %v1333_v6 = vld [vmem:[%s2629_s3 + $0x6a8] sm:$0xff] }
 0x110   :  { %1539 = vmatprep.subr.mxu0 %v1268_v9  ;;  %1574 = vmatprep.subr.mxu1 %v1300_v10  ;;  %v1350_v5 = vld [vmem:[%s2629_s3 + $0x730] sm:$0xff]  ;;  %v1365_v8 = vld [vmem:[%s2629_s3 + $0x7a8] sm:$0xff] }
 0x111   :  { %1540 = vmatpush3.msra.mxu0 %v1252_v11  ;;  %1575 = vmatpush3.msra.mxu1 %v1284_v12  ;;  %v1317_v9 = vld [vmem:[%s2629_s3 + $0x628] sm:$0xff]  ;;  %v1332_v11 = vld [vmem:[%s2629_s3 + $0x6a0] sm:$0xff] }
 0x112   :  { %1541 = vmatprep.subr.mxu0 %v1267_v14  ;;  %1576 = vmatprep.subr.mxu1 %v1299_v15  ;;  %v1349_v10 = vld [vmem:[%s2629_s3 + $0x728] sm:$0xff]  ;;  %v1364_v12 = vld [vmem:[%s2629_s3 + $0x7a0] sm:$0xff] }
 0x113   :  { %1542 = vmatpush3.msra.mxu0 %v1251_v16  ;;  %1577 = vmatpush3.msra.mxu1 %v1283_v17  ;;  %v1316_v14 = vld [vmem:[%s2629_s3 + $0x620] sm:$0xff]  ;;  %v1331_v16 = vld [vmem:[%s2629_s3 + $0x698] sm:$0xff] }
 0x114   :  { %1543 = vmatprep.subr.mxu0 %v1266_v33  ;;  %1578 = vmatprep.subr.mxu1 %v1298_v34  ;;  %v1348_v15 = vld [vmem:[%s2629_s3 + $0x720] sm:$0xff]  ;;  %v1363_v17 = vld [vmem:[%s2629_s3 + $0x798] sm:$0xff] }
 0x115   :  { %1544 = vmatpush3.msra.mxu0 %v1250_v20  ;;  %1579 = vmatpush3.msra.mxu1 %v1282_v21  ;;  %v1315_v33 = vld [vmem:[%s2629_s3 + $0x618] sm:$0xff]  ;;  %v1330_v20 = vld [vmem:[%s2629_s3 + $0x690] sm:$0xff] }
 0x116   :  { %1545 = vmatprep.subr.mxu0 %v1265_v23  ;;  %1580 = vmatprep.subr.mxu1 %v1297_v24  ;;  %v1347_v34 = vld [vmem:[%s2629_s3 + $0x718] sm:$0xff]  ;;  %v1362_v21 = vld [vmem:[%s2629_s3 + $0x790] sm:$0xff] }
 0x117   :  { %1546 = vmatpush3.msra.mxu0 %v1249_v25  ;;  %1581 = vmatpush3.msra.mxu1 %v1281_v26  ;;  %v1314_v23 = vld [vmem:[%s2629_s3 + $0x610] sm:$0xff]  ;;  %v1329_v25 = vld [vmem:[%s2629_s3 + $0x688] sm:$0xff] }
 0x118   :  { %1547 = vmatprep.subr.mxu0 %v1264_v37  ;;  %1582 = vmatprep.subr.mxu1 %v1296_v38  ;;  %v1346_v24 = vld [vmem:[%s2629_s3 + $0x710] sm:$0xff]  ;;  %v1361_v26 = vld [vmem:[%s2629_s3 + $0x788] sm:$0xff] }
 0x119   :  { %1548 = vmatpush3.msra.mxu0 %v1248_v27  ;;  %1583 = vmatpush3.msra.mxu1 %v1280_v28  ;;  %v1313_v37 = vld [vmem:[%s2629_s3 + $0x608] sm:$0xff]  ;;  %v1328_v27 = vld [vmem:[%s2629_s3 + $0x680] sm:$0xff] }
 0x11a   :  { %774 = vmatmul.mubr.f32.vlgmr.msra.gmra.mxu0 %v2033_v2  ;;  %886 = vmatmul.mubr.f32.vlgmr.msra.gmra.mxu1 %v2044_v7  ;;  %v1326_v2 = vld [vmem:[%s2629_s3 + $0x670] sm:$0xff]  ;;  %v1345_v38 = vld [vmem:[%s2629_s3 + $0x708] sm:$0xff]  ;;  %v1360_v28 = vld [vmem:[%s2629_s3 + $0x780] sm:$0xff] }
 0x11b   :  { %1587 = vmatprep.subr.mxu0 %v1343_v29  ;;  %1622 = vmatprep.subr.mxu1 %v1375_v30  ;;  %v1358_v7 = vld [vmem:[%s2629_s3 + $0x770] sm:$0xff]  ;;  %v1312_v29 = vld [vmem:[%s2629_s3 + $0x600] sm:$0xff] }
 0x11c   :  { %1588 = vmatpush3.msra.mxu0 %v1327_v31  ;;  %997 = vmatprep.mubr.f32.mxu0 %v2056_v13  ;;  %v1325_v13 = vld [vmem:[%s2629_s3 + $0x668] sm:$0xff]  ;;  %v1344_v30 = vld [vmem:[%s2629_s3 + $0x700] sm:$0xff] }
 0x11d   :  { %1623 = vmatpush3.msra.mxu1 %v1359_v32  ;;  %1109 = vmatprep.mubr.f32.mxu1 %v2067_v18  ;;  %v1340_v18 = vld [vmem:[%s2629_s3 + $0x6e0] sm:$0xff] }
 0x11e   :  { %1589 = vmatprep.subr.mxu0 %v1342_v35  ;;  %1624 = vmatprep.subr.mxu1 %v1374_v36 }
 0x11f   :  { %1590 = vmatpush3.msra.mxu0 %v1326_v2  ;;  %1625 = vmatpush3.msra.mxu1 %v1358_v7 }
 0x120   :  { %1591 = vmatprep.subr.mxu0 %v1341_v39  ;;  %1626 = vmatprep.subr.mxu1 %v1373_v40 }
 0x121   :  { %1592 = vmatpush3.msra.mxu0 %v1325_v13  ;;  %1627 = vmatpush3.msra.mxu1 %v1357_v41 }
 0x122   :  { %1593 = vmatprep.subr.mxu0 %v1340_v18  ;;  %1628 = vmatprep.subr.mxu1 %v1372_v42 }
 0x123   :  { %1594 = vmatpush3.msra.mxu0 %v1324_v43  ;;  %1629 = vmatpush3.msra.mxu1 %v1356_v44 }
 0x124   :  { %1595 = vmatprep.subr.mxu0 %v1339_v45  ;;  %1630 = vmatprep.subr.mxu1 %v1371_v46 }
 0x125   :  { %1596 = vmatpush3.msra.mxu0 %v1323_v47  ;;  %1631 = vmatpush3.msra.mxu1 %v1355_v48 }
 0x126   :  { %1597 = vmatprep.subr.mxu0 %v1338_v49  ;;  %1632 = vmatprep.subr.mxu1 %v1370_v50 }
 0x127   :  { %1598 = vmatpush3.msra.mxu0 %v1322_v51  ;;  %1633 = vmatpush3.msra.mxu1 %v1354_v52 }
 0x128   :  { %1599 = vmatprep.subr.mxu0 %v1337_v53  ;;  %1634 = vmatprep.subr.mxu1 %v1369_v54 }
 0x129   :  { %1600 = vmatpush3.msra.mxu0 %v1321_v55  ;;  %1635 = vmatpush3.msra.mxu1 %v1353_v56 }
 0x12a   :  { %1601 = vmatprep.subr.mxu0 %v1336_v57  ;;  %1636 = vmatprep.subr.mxu1 %v1368_v58 }
 0x12b   :  { %1602 = vmatpush3.msra.mxu0 %v1320_v59  ;;  %1637 = vmatpush3.msra.mxu1 %v1352_v60  ;;  %v1376_v59 = vld [vmem:[%s2632_s4] ss:$0 sm:$0xff] }
 0x12c   :  { %1603 = vmatprep.subr.mxu0 %v1335_v61  ;;  %1638 = vmatprep.subr.mxu1 %v1367_v62 }
 0x12d   :  { %1604 = vmatpush3.msra.mxu0 %v1319_v63  ;;  %1639 = vmatpush3.msra.mxu1 %v1351_v0 }
 0x12e   :  { %1605 = vmatprep.subr.mxu0 %v1334_v1  ;;  %1640 = vmatprep.subr.mxu1 %v1366_v3 }
 0x12f   :  { %1606 = vmatpush3.msra.mxu0 %v1318_v4  ;;  %1641 = vmatpush3.msra.mxu1 %v1350_v5 }
 0x130   :  { %1607 = vmatprep.subr.mxu0 %v1333_v6  ;;  %1642 = vmatprep.subr.mxu1 %v1365_v8 }
 0x131   :  { %1608 = vmatpush3.msra.mxu0 %v1317_v9  ;;  %1643 = vmatpush3.msra.mxu1 %v1349_v10 }
 0x132   :  { %1609 = vmatprep.subr.mxu0 %v1332_v11  ;;  %1644 = vmatprep.subr.mxu1 %v1364_v12 }
 0x133   :  { %1610 = vmatpush3.msra.mxu0 %v1316_v14  ;;  %1645 = vmatpush3.msra.mxu1 %v1348_v15 }
 0x134   :  { %1611 = vmatprep.subr.mxu0 %v1331_v16  ;;  %1646 = vmatprep.subr.mxu1 %v1363_v17 }
 0x135   :  { %1612 = vmatpush3.msra.mxu0 %v1315_v33  ;;  %1647 = vmatpush3.msra.mxu1 %v1347_v34 }
 0x136   :  { %1613 = vmatprep.subr.mxu0 %v1330_v20  ;;  %1648 = vmatprep.subr.mxu1 %v1362_v21 }
 0x137   :  { %1614 = vmatpush3.msra.mxu0 %v1314_v23  ;;  %1649 = vmatpush3.msra.mxu1 %v1346_v24 }
 0x138   :  { %1615 = vmatprep.subr.mxu0 %v1329_v25  ;;  %1650 = vmatprep.subr.mxu1 %v1361_v26 }
 0x139   :  { %1616 = vmatpush3.msra.mxu0 %v1313_v37  ;;  %1651 = vmatpush3.msra.mxu1 %v1345_v38 }
 0x13a   :  { %1617 = vmatprep.subr.mxu0 %v1328_v27  ;;  %1652 = vmatprep.subr.mxu1 %v1360_v28 }
 0x13b   :  { %1618 = vmatpush3.msra.mxu0 %v1312_v29  ;;  %1653 = vmatpush3.msra.mxu1 %v1344_v30 }
 0x13c   :  { %998 = vmatmul.mubr.f32.vlgmr.msra.gmra.mxu0 %v2070_v19  ;;  %1110 = vmatmul.mubr.f32.vlgmr.msra.gmra.mxu1 %v2079_v22 }
 0x197   :  { %v1409_v31 = vpop.f32.mrf.mxu0  ;;  %v1444_v32 = vpop.f32.mrf.mxu1 }
 0x199   :  { %v1410_v35 = vpop.f32.mrf.mxu0  ;;  %v1445_v2 = vpop.f32.mrf.mxu1 }
 0x19a   :  { %v1411_v39 = vadd.f32 %v1410_v35, %v1409_v31  ;;  %v1446_v40 = vadd.f32 %v1445_v2, %v1444_v32 }
 0x19c   :  { %v441_v42 = vadd.f32 %v1446_v40, %v1411_v39 }
 0x1b8   :  { %v1479_v36 = vpop.f32.mrf.mxu0  ;;  %v1514_v13 = vpop.f32.mrf.mxu1 }
 0x1ba   :  { %v1480_v7 = vpop.f32.mrf.mxu0  ;;  %v1515_v43 = vpop.f32.mrf.mxu1 }
 0x1bb   :  { %v1481_v18 = vadd.f32 %v1480_v7, %v1479_v36  ;;  %v1516_v47 = vadd.f32 %v1515_v43, %v1514_v13 }
 0x1bd   :  { %v555_v45 = vadd.f32 %v1481_v18, %v441_v42 }
 0x1bf   :  { %v667_v48 = vadd.f32 %v1516_v47, %v555_v45 }
 0x1da   :  { %v1549_v41 = vpop.f32.mrf.mxu0  ;;  %v1584_v46 = vpop.f32.mrf.mxu1 }
 0x1dc   :  { %v1550_v44 = vpop.f32.mrf.mxu0  ;;  %v1585_v22 = vpop.f32.mrf.mxu1 }
 0x1dd   :  { %v1551_v19 = vadd.f32 %v1550_v44, %v1549_v41  ;;  %v1586_v52 = vadd.f32 %v1585_v22, %v1584_v46 }
 0x1df   :  { %v779_v49 = vadd.f32 %v1551_v19, %v667_v48 }
 0x1e1   :  { %v891_v55 = vadd.f32 %v1586_v52, %v779_v49 }
 0x1fc   :  { %v1619_v50 = vpop.f32.mrf.mxu0  ;;  %v1654_v51 = vpop.f32.mrf.mxu1 }
 0x1fe   :  { %v1620_v53 = vpop.f32.mrf.mxu0  ;;  %v1655_v54 = vpop.f32.mrf.mxu1 }
 0x1ff   :  { %v1621_v56 = vadd.f32 %v1620_v53, %v1619_v50  ;;  %v1656_v58 = vadd.f32 %v1655_v54, %v1654_v51 }
 0x201   :  { %v1003_v57 = vadd.f32 %v1621_v56, %v891_v55 }
 0x203   :  { %v1115_v60 = vadd.f32 %v1656_v58, %v1003_v57 }
 0x205   :  { %v1123_v61 = vadd.f32 %v1376_v59, %v1115_v60 }
 0x207   :  { %1125 = vst.msk [vmem:[%s2633_s6] sm:$0x3] %vm1124_vm3, %v1123_v61 }

</bundles_post_ra>
